<compile_context>
chip_gen: v6e
topology: v6e:2x2x1
jax: 0.10.0
libtpu: 0.0.40
codegen_flags: <defaults>
</compile_context>

<pallas_src>
import jax
import jax.numpy as jnp
from jax.experimental import pallas as pl
from jax.experimental.pallas import tpu as pltpu


def _make_kernel(B, C, Epad):
    def kernel(ids_ref, table_ref, w1_ref, b1_ref, w2_ref, b2_ref, out_ref,
               embeds_ref):
        # ids_ref:    (B*C,) int32 in SMEM (scalar prefetch)
        # table_ref:  (vocab, Epad) f32   VMEM resident
        # w1_ref:     (C*Epad, H)  bf16   VMEM resident
        # b1_ref:     (1, H)       f32    VMEM resident
        # w2_ref:     (H, tn)      bf16   vocab tile j
        # b2_ref:     (1, tn)      f32    vocab tile j
        # out_ref:    (B, tn)      f32    vocab tile j
        # embeds_ref: (B, C*Epad)  f32    scratch slab for the fused gather

        # Fused embedding gather: build the flattened (B, C*Epad) slab.
        # Static (unrolled) loop over B*C tokens; only the table row index is
        # dynamic.  Each copy is one lane-aligned (1, 128) row.
        for b in range(B):
            for c in range(C):
                tok = ids_ref[b * C + c]
                embeds_ref[pl.ds(b, 1), pl.ds(c * Epad, Epad)] = (
                    table_ref[pl.ds(tok, 1), :])

        # fc1 + ReLU: bf16 MXU matmul, f32 accumulate, f32 VPU bias/ReLU.
        h = jnp.dot(embeds_ref[...].astype(jnp.bfloat16), w1_ref[...],
                    preferred_element_type=jnp.float32)
        h = jnp.maximum(h + b1_ref[...], 0.0)

        # fc2 for this vocab tile (hidden stays in vregs between the matmuls).
        logits = jnp.dot(h.astype(jnp.bfloat16), w2_ref[...],
                         preferred_element_type=jnp.float32)
        out_ref[...] = (logits + b2_ref[...]).astype(out_ref.dtype)

    return kernel


def neural_lm2_forward(x, embedding_table, w1, b1, w2, b2):
    """NeuralLM2 forward.

    x:               (B, C) int32 token indices
    embedding_table: (vocab, E) f32 frozen pretrained embeddings
    w1: (C*E, H)  b1: (H,)   fc1 stored as (in, out): y = x @ w1 + b1
    w2: (H, V)    b2: (V,)   fc2 stored as (in, out)
    returns (B, V) f32 logits (matches torch semantics numerically, bf16 weights).
    """
    B, C = x.shape
    vocab, E = embedding_table.shape
    K, H = w1.shape
    assert K == C * E
    _, V = w2.shape

    LANE = 128
    rup = lambda a, m: (a + m - 1) // m * m

    # ---- lane-align the contraction dim: pad E up to a multiple of 128 ----
    Epad = rup(E, LANE)
    Kpad = C * Epad
    table_p = jnp.pad(embedding_table.astype(jnp.float32),
                      ((0, 0), (0, Epad - E)))
    # Re-layout w1 so each context slot's padded embed columns hit zero rows.
    w1_p = jnp.pad(w1.astype(jnp.float32).reshape(C, E, H),
                   ((0, 0), (0, Epad - E), (0, 0)))
    w1_p = w1_p.reshape(Kpad, H).astype(jnp.bfloat16)
    b1_p = b1.astype(jnp.float32).reshape(1, H)

    # ---- lane-dense vocab tiles: width multiple of 128, capped at 1024 ----
    Vpad = rup(V, LANE)
    tn = Vpad if Vpad <= 1024 else 1024
    Vpad = rup(V, tn)
    nv = Vpad // tn

    w2_p = jnp.pad(w2.astype(jnp.float32),
                   ((0, 0), (0, Vpad - V))).astype(jnp.bfloat16)
    b2_p = jnp.pad(b2.astype(jnp.float32), (0, Vpad - V)).reshape(1, Vpad)

    ids = x.reshape(-1).astype(jnp.int32)   # (B*C,) -> SMEM via scalar prefetch

    grid_spec = pltpu.PrefetchScalarGridSpec(
        num_scalar_prefetch=1,              # token ids land in SMEM before grid
        grid=(nv,),                         # tile fc2 / output over the vocab dim
        in_specs=[
            pl.BlockSpec((vocab, Epad), lambda j, ids: (0, 0)),  # table resident
            pl.BlockSpec((Kpad, H),     lambda j, ids: (0, 0)),  # w1 resident
            pl.BlockSpec((1, H),        lambda j, ids: (0, 0)),  # b1 resident
            pl.BlockSpec((H, tn),       lambda j, ids: (0, j)),  # w2 vocab tile
            pl.BlockSpec((1, tn),       lambda j, ids: (0, j)),  # b2 vocab tile
        ],
        out_specs=pl.BlockSpec((B, tn), lambda j, ids: (0, j)),
        scratch_shapes=[
            pltpu.VMEM((B, Kpad), jnp.float32),   # flattened embed slab
        ],
    )

    out = pl.pallas_call(
        _make_kernel(B, C, Epad),
        out_shape=jax.ShapeDtypeStruct((B, Vpad), jnp.float32),
        grid_spec=grid_spec,
        # Each vocab tile recomputes the (tiny) gather + fc1, so tiles are
        # fully independent -> "parallel" engages the 2nd TensorCore on v7x.
        compiler_params=pltpu.CompilerParams(
            dimension_semantics=("parallel",)),
    )(ids, table_p, w1_p, b1_p, w2_p, b2_p)

    return out[:, :V] if Vpad != V else out


if __name__ == "__main__":
    # Small, module-consistent shapes: Word2VecModel(vocab, 100, 2) embeddings,
    # hidden_dim=128, context_size=3.
    vocab_size = 256
    embedding_dim = 100
    hidden_dim = 128
    context_size = 3
    batch = 8

    key = jax.random.PRNGKey(0)
    k_emb, k_w1, k_b1, k_w2, k_b2, k_x = jax.random.split(key, 6)

    pretrained_embeddings = jax.random.normal(
        k_emb, (vocab_size, embedding_dim), dtype=jnp.float32)
    w1 = jax.random.normal(
        k_w1, (embedding_dim * context_size, hidden_dim), dtype=jnp.float32) * 0.02
    b1 = jax.random.normal(k_b1, (hidden_dim,), dtype=jnp.float32) * 0.02
    w2 = jax.random.normal(
        k_w2, (hidden_dim, vocab_size), dtype=jnp.float32) * 0.02
    b2 = jax.random.normal(k_b2, (vocab_size,), dtype=jnp.float32) * 0.02

    x = jax.random.randint(k_x, (batch, context_size), 0, vocab_size,
                           dtype=jnp.int32)

    fwd = jax.jit(neural_lm2_forward)
    out = fwd(x, pretrained_embeddings, w1, b1, w2, b2)
    out = jax.block_until_ready(out)

    # Reference with the same bf16 weight rounding the kernel uses
    # (f32 accumulation both ways -> only accumulation-order differences).
    def bf16(v):
        return v.astype(jnp.bfloat16).astype(jnp.float32)

    emb = jnp.take(pretrained_embeddings, x, axis=0).reshape(batch, -1)
    hid = jnp.maximum(bf16(emb) @ bf16(w1) + b1, 0.0)
    ref = bf16(hid) @ bf16(w2) + b2

    assert out.shape == (batch, vocab_size)
    assert jnp.allclose(out, ref, atol=2e-3, rtol=2e-3), \
        float(jnp.max(jnp.abs(out - ref)))

    print("KERNEL_OK")
</pallas_src>

<mosaic_0001>
module attributes {stable_mosaic.version = 11 : i64} {
  func.func @kernel(%arg0: i32, %arg1: memref<24xi32, #tpu.memory_space<smem>>, %arg2: memref<256x128xf32, #tpu.memory_space<vmem>>, %arg3: memref<384x128xbf16, #tpu.memory_space<vmem>>, %arg4: memref<1x128xf32, #tpu.memory_space<vmem>>, %arg5: memref<128x256xbf16, #tpu.memory_space<vmem>>, %arg6: memref<1x256xf32, #tpu.memory_space<vmem>>, %arg7: memref<8x256xf32, #tpu.memory_space<vmem>>, %arg8: memref<8x384xf32, #tpu.memory_space<vmem>>) attributes {dimension_semantics = [#tpu.dimension_semantics<parallel>], iteration_bounds = array<i64: 1>, scalar_prefetch = 1 : i64, scratch_operands = 1 : i64, tpu.core_type = #tpu.core_type<tc>, window_params = [{pipeline_mode = #tpu.pipeline_mode<synchronous>, transform_indices = @transform_0, window_bounds = array<i64: 256, 128>}, {pipeline_mode = #tpu.pipeline_mode<synchronous>, transform_indices = @transform_1, window_bounds = array<i64: 384, 128>}, {pipeline_mode = #tpu.pipeline_mode<synchronous>, transform_indices = @transform_2, window_bounds = array<i64: 1, 128>}, {transform_indices = @transform_3, window_bounds = array<i64: 128, 256>}, {transform_indices = @transform_4, window_bounds = array<i64: 1, 256>}, {transform_indices = @transform_5, window_bounds = array<i64: 8, 256>}]} {
    %c0 = arith.constant 0 : index
    %0 = memref.load %arg1[%c0] : memref<24xi32, #tpu.memory_space<smem>>
    %1 = arith.index_cast %0 : i32 to index
    %c0_0 = arith.constant 0 : index
    %2 = vector.load %arg2[%1, %c0_0] : memref<256x128xf32, #tpu.memory_space<vmem>>, vector<1x128xf32>
    %c0_1 = arith.constant 0 : index
    %c0_2 = arith.constant 0 : index
    %3 = vector.load %arg8[%c0_1, %c0_2] : memref<8x384xf32, #tpu.memory_space<vmem>>, vector<1x128xf32>
    tpu.vector_store %arg8[%c0_1, %c0_2], %2 {strides = array<i32>} : memref<8x384xf32, #tpu.memory_space<vmem>>, vector<1x128xf32>,
    %c1 = arith.constant 1 : index
    %4 = memref.load %arg1[%c1] : memref<24xi32, #tpu.memory_space<smem>>
    %5 = arith.index_cast %4 : i32 to index
    %c0_3 = arith.constant 0 : index
    %6 = vector.load %arg2[%5, %c0_3] : memref<256x128xf32, #tpu.memory_space<vmem>>, vector<1x128xf32>
    %c0_4 = arith.constant 0 : index
    %c128 = arith.constant 128 : index
    %7 = vector.load %arg8[%c0_4, %c128] : memref<8x384xf32, #tpu.memory_space<vmem>>, vector<1x128xf32>
    tpu.vector_store %arg8[%c0_4, %c128], %6 {strides = array<i32>} : memref<8x384xf32, #tpu.memory_space<vmem>>, vector<1x128xf32>,
    %c2 = arith.constant 2 : index
    %8 = memref.load %arg1[%c2] : memref<24xi32, #tpu.memory_space<smem>>
    %9 = arith.index_cast %8 : i32 to index
    %c0_5 = arith.constant 0 : index
    %10 = vector.load %arg2[%9, %c0_5] : memref<256x128xf32, #tpu.memory_space<vmem>>, vector<1x128xf32>
    %c0_6 = arith.constant 0 : index
    %c256 = arith.constant 256 : index
    %11 = vector.load %arg8[%c0_6, %c256] : memref<8x384xf32, #tpu.memory_space<vmem>>, vector<1x128xf32>
    tpu.vector_store %arg8[%c0_6, %c256], %10 {strides = array<i32>} : memref<8x384xf32, #tpu.memory_space<vmem>>, vector<1x128xf32>,
    %c3 = arith.constant 3 : index
    %12 = memref.load %arg1[%c3] : memref<24xi32, #tpu.memory_space<smem>>
    %13 = arith.index_cast %12 : i32 to index
    %c0_7 = arith.constant 0 : index
    %14 = vector.load %arg2[%13, %c0_7] : memref<256x128xf32, #tpu.memory_space<vmem>>, vector<1x128xf32>
    %c1_8 = arith.constant 1 : index
    %c0_9 = arith.constant 0 : index
    %15 = vector.load %arg8[%c1_8, %c0_9] : memref<8x384xf32, #tpu.memory_space<vmem>>, vector<1x128xf32>
    tpu.vector_store %arg8[%c1_8, %c0_9], %14 {strides = array<i32>} : memref<8x384xf32, #tpu.memory_space<vmem>>, vector<1x128xf32>,
    %c4 = arith.constant 4 : index
    %16 = memref.load %arg1[%c4] : memref<24xi32, #tpu.memory_space<smem>>
    %17 = arith.index_cast %16 : i32 to index
    %c0_10 = arith.constant 0 : index
    %18 = vector.load %arg2[%17, %c0_10] : memref<256x128xf32, #tpu.memory_space<vmem>>, vector<1x128xf32>
    %c1_11 = arith.constant 1 : index
    %c128_12 = arith.constant 128 : index
    %19 = vector.load %arg8[%c1_11, %c128_12] : memref<8x384xf32, #tpu.memory_space<vmem>>, vector<1x128xf32>
    tpu.vector_store %arg8[%c1_11, %c128_12], %18 {strides = array<i32>} : memref<8x384xf32, #tpu.memory_space<vmem>>, vector<1x128xf32>,
    %c5 = arith.constant 5 : index
    %20 = memref.load %arg1[%c5] : memref<24xi32, #tpu.memory_space<smem>>
    %21 = arith.index_cast %20 : i32 to index
    %c0_13 = arith.constant 0 : index
    %22 = vector.load %arg2[%21, %c0_13] : memref<256x128xf32, #tpu.memory_space<vmem>>, vector<1x128xf32>
    %c1_14 = arith.constant 1 : index
    %c256_15 = arith.constant 256 : index
    %23 = vector.load %arg8[%c1_14, %c256_15] : memref<8x384xf32, #tpu.memory_space<vmem>>, vector<1x128xf32>
    tpu.vector_store %arg8[%c1_14, %c256_15], %22 {strides = array<i32>} : memref<8x384xf32, #tpu.memory_space<vmem>>, vector<1x128xf32>,
    %c6 = arith.constant 6 : index
    %24 = memref.load %arg1[%c6] : memref<24xi32, #tpu.memory_space<smem>>
    %25 = arith.index_cast %24 : i32 to index
    %c0_16 = arith.constant 0 : index
    %26 = vector.load %arg2[%25, %c0_16] : memref<256x128xf32, #tpu.memory_space<vmem>>, vector<1x128xf32>
    %c2_17 = arith.constant 2 : index
    %c0_18 = arith.constant 0 : index
    %27 = vector.load %arg8[%c2_17, %c0_18] : memref<8x384xf32, #tpu.memory_space<vmem>>, vector<1x128xf32>
    tpu.vector_store %arg8[%c2_17, %c0_18], %26 {strides = array<i32>} : memref<8x384xf32, #tpu.memory_space<vmem>>, vector<1x128xf32>,
    %c7 = arith.constant 7 : index
    %28 = memref.load %arg1[%c7] : memref<24xi32, #tpu.memory_space<smem>>
    %29 = arith.index_cast %28 : i32 to index
    %c0_19 = arith.constant 0 : index
    %30 = vector.load %arg2[%29, %c0_19] : memref<256x128xf32, #tpu.memory_space<vmem>>, vector<1x128xf32>
    %c2_20 = arith.constant 2 : index
    %c128_21 = arith.constant 128 : index
    %31 = vector.load %arg8[%c2_20, %c128_21] : memref<8x384xf32, #tpu.memory_space<vmem>>, vector<1x128xf32>
    tpu.vector_store %arg8[%c2_20, %c128_21], %30 {strides = array<i32>} : memref<8x384xf32, #tpu.memory_space<vmem>>, vector<1x128xf32>,
    %c8 = arith.constant 8 : index
    %32 = memref.load %arg1[%c8] : memref<24xi32, #tpu.memory_space<smem>>
    %33 = arith.index_cast %32 : i32 to index
    %c0_22 = arith.constant 0 : index
    %34 = vector.load %arg2[%33, %c0_22] : memref<256x128xf32, #tpu.memory_space<vmem>>, vector<1x128xf32>
    %c2_23 = arith.constant 2 : index
    %c256_24 = arith.constant 256 : index
    %35 = vector.load %arg8[%c2_23, %c256_24] : memref<8x384xf32, #tpu.memory_space<vmem>>, vector<1x128xf32>
    tpu.vector_store %arg8[%c2_23, %c256_24], %34 {strides = array<i32>} : memref<8x384xf32, #tpu.memory_space<vmem>>, vector<1x128xf32>,
    %c9 = arith.constant 9 : index
    %36 = memref.load %arg1[%c9] : memref<24xi32, #tpu.memory_space<smem>>
    %37 = arith.index_cast %36 : i32 to index
    %c0_25 = arith.constant 0 : index
    %38 = vector.load %arg2[%37, %c0_25] : memref<256x128xf32, #tpu.memory_space<vmem>>, vector<1x128xf32>
    %c3_26 = arith.constant 3 : index
    %c0_27 = arith.constant 0 : index
    %39 = vector.load %arg8[%c3_26, %c0_27] : memref<8x384xf32, #tpu.memory_space<vmem>>, vector<1x128xf32>
    tpu.vector_store %arg8[%c3_26, %c0_27], %38 {strides = array<i32>} : memref<8x384xf32, #tpu.memory_space<vmem>>, vector<1x128xf32>,
    %c10 = arith.constant 10 : index
    %40 = memref.load %arg1[%c10] : memref<24xi32, #tpu.memory_space<smem>>
    %41 = arith.index_cast %40 : i32 to index
    %c0_28 = arith.constant 0 : index
    %42 = vector.load %arg2[%41, %c0_28] : memref<256x128xf32, #tpu.memory_space<vmem>>, vector<1x128xf32>
    %c3_29 = arith.constant 3 : index
    %c128_30 = arith.constant 128 : index
    %43 = vector.load %arg8[%c3_29, %c128_30] : memref<8x384xf32, #tpu.memory_space<vmem>>, vector<1x128xf32>
    tpu.vector_store %arg8[%c3_29, %c128_30], %42 {strides = array<i32>} : memref<8x384xf32, #tpu.memory_space<vmem>>, vector<1x128xf32>,
    %c11 = arith.constant 11 : index
    %44 = memref.load %arg1[%c11] : memref<24xi32, #tpu.memory_space<smem>>
    %45 = arith.index_cast %44 : i32 to index
    %c0_31 = arith.constant 0 : index
    %46 = vector.load %arg2[%45, %c0_31] : memref<256x128xf32, #tpu.memory_space<vmem>>, vector<1x128xf32>
    %c3_32 = arith.constant 3 : index
    %c256_33 = arith.constant 256 : index
    %47 = vector.load %arg8[%c3_32, %c256_33] : memref<8x384xf32, #tpu.memory_space<vmem>>, vector<1x128xf32>
    tpu.vector_store %arg8[%c3_32, %c256_33], %46 {strides = array<i32>} : memref<8x384xf32, #tpu.memory_space<vmem>>, vector<1x128xf32>,
    %c12 = arith.constant 12 : index
    %48 = memref.load %arg1[%c12] : memref<24xi32, #tpu.memory_space<smem>>
    %49 = arith.index_cast %48 : i32 to index
    %c0_34 = arith.constant 0 : index
    %50 = vector.load %arg2[%49, %c0_34] : memref<256x128xf32, #tpu.memory_space<vmem>>, vector<1x128xf32>
    %c4_35 = arith.constant 4 : index
    %c0_36 = arith.constant 0 : index
    %51 = vector.load %arg8[%c4_35, %c0_36] : memref<8x384xf32, #tpu.memory_space<vmem>>, vector<1x128xf32>
    tpu.vector_store %arg8[%c4_35, %c0_36], %50 {strides = array<i32>} : memref<8x384xf32, #tpu.memory_space<vmem>>, vector<1x128xf32>,
    %c13 = arith.constant 13 : index
    %52 = memref.load %arg1[%c13] : memref<24xi32, #tpu.memory_space<smem>>
    %53 = arith.index_cast %52 : i32 to index
    %c0_37 = arith.constant 0 : index
    %54 = vector.load %arg2[%53, %c0_37] : memref<256x128xf32, #tpu.memory_space<vmem>>, vector<1x128xf32>
    %c4_38 = arith.constant 4 : index
    %c128_39 = arith.constant 128 : index
    %55 = vector.load %arg8[%c4_38, %c128_39] : memref<8x384xf32, #tpu.memory_space<vmem>>, vector<1x128xf32>
    tpu.vector_store %arg8[%c4_38, %c128_39], %54 {strides = array<i32>} : memref<8x384xf32, #tpu.memory_space<vmem>>, vector<1x128xf32>,
    %c14 = arith.constant 14 : index
    %56 = memref.load %arg1[%c14] : memref<24xi32, #tpu.memory_space<smem>>
    %57 = arith.index_cast %56 : i32 to index
    %c0_40 = arith.constant 0 : index
    %58 = vector.load %arg2[%57, %c0_40] : memref<256x128xf32, #tpu.memory_space<vmem>>, vector<1x128xf32>
    %c4_41 = arith.constant 4 : index
    %c256_42 = arith.constant 256 : index
    %59 = vector.load %arg8[%c4_41, %c256_42] : memref<8x384xf32, #tpu.memory_space<vmem>>, vector<1x128xf32>
    tpu.vector_store %arg8[%c4_41, %c256_42], %58 {strides = array<i32>} : memref<8x384xf32, #tpu.memory_space<vmem>>, vector<1x128xf32>,
    %c15 = arith.constant 15 : index
    %60 = memref.load %arg1[%c15] : memref<24xi32, #tpu.memory_space<smem>>
    %61 = arith.index_cast %60 : i32 to index
    %c0_43 = arith.constant 0 : index
    %62 = vector.load %arg2[%61, %c0_43] : memref<256x128xf32, #tpu.memory_space<vmem>>, vector<1x128xf32>
    %c5_44 = arith.constant 5 : index
    %c0_45 = arith.constant 0 : index
    %63 = vector.load %arg8[%c5_44, %c0_45] : memref<8x384xf32, #tpu.memory_space<vmem>>, vector<1x128xf32>
    tpu.vector_store %arg8[%c5_44, %c0_45], %62 {strides = array<i32>} : memref<8x384xf32, #tpu.memory_space<vmem>>, vector<1x128xf32>,
    %c16 = arith.constant 16 : index
    %64 = memref.load %arg1[%c16] : memref<24xi32, #tpu.memory_space<smem>>
    %65 = arith.index_cast %64 : i32 to index
    %c0_46 = arith.constant 0 : index
    %66 = vector.load %arg2[%65, %c0_46] : memref<256x128xf32, #tpu.memory_space<vmem>>, vector<1x128xf32>
    %c5_47 = arith.constant 5 : index
    %c128_48 = arith.constant 128 : index
    %67 = vector.load %arg8[%c5_47, %c128_48] : memref<8x384xf32, #tpu.memory_space<vmem>>, vector<1x128xf32>
    tpu.vector_store %arg8[%c5_47, %c128_48], %66 {strides = array<i32>} : memref<8x384xf32, #tpu.memory_space<vmem>>, vector<1x128xf32>,
    %c17 = arith.constant 17 : index
    %68 = memref.load %arg1[%c17] : memref<24xi32, #tpu.memory_space<smem>>
    %69 = arith.index_cast %68 : i32 to index
    %c0_49 = arith.constant 0 : index
    %70 = vector.load %arg2[%69, %c0_49] : memref<256x128xf32, #tpu.memory_space<vmem>>, vector<1x128xf32>
    %c5_50 = arith.constant 5 : index
    %c256_51 = arith.constant 256 : index
    %71 = vector.load %arg8[%c5_50, %c256_51] : memref<8x384xf32, #tpu.memory_space<vmem>>, vector<1x128xf32>
    tpu.vector_store %arg8[%c5_50, %c256_51], %70 {strides = array<i32>} : memref<8x384xf32, #tpu.memory_space<vmem>>, vector<1x128xf32>,
    %c18 = arith.constant 18 : index
    %72 = memref.load %arg1[%c18] : memref<24xi32, #tpu.memory_space<smem>>
    %73 = arith.index_cast %72 : i32 to index
    %c0_52 = arith.constant 0 : index
    %74 = vector.load %arg2[%73, %c0_52] : memref<256x128xf32, #tpu.memory_space<vmem>>, vector<1x128xf32>
    %c6_53 = arith.constant 6 : index
    %c0_54 = arith.constant 0 : index
    %75 = vector.load %arg8[%c6_53, %c0_54] : memref<8x384xf32, #tpu.memory_space<vmem>>, vector<1x128xf32>
    tpu.vector_store %arg8[%c6_53, %c0_54], %74 {strides = array<i32>} : memref<8x384xf32, #tpu.memory_space<vmem>>, vector<1x128xf32>,
    %c19 = arith.constant 19 : index
    %76 = memref.load %arg1[%c19] : memref<24xi32, #tpu.memory_space<smem>>
    %77 = arith.index_cast %76 : i32 to index
    %c0_55 = arith.constant 0 : index
    %78 = vector.load %arg2[%77, %c0_55] : memref<256x128xf32, #tpu.memory_space<vmem>>, vector<1x128xf32>
    %c6_56 = arith.constant 6 : index
    %c128_57 = arith.constant 128 : index
    %79 = vector.load %arg8[%c6_56, %c128_57] : memref<8x384xf32, #tpu.memory_space<vmem>>, vector<1x128xf32>
    tpu.vector_store %arg8[%c6_56, %c128_57], %78 {strides = array<i32>} : memref<8x384xf32, #tpu.memory_space<vmem>>, vector<1x128xf32>,
    %c20 = arith.constant 20 : index
    %80 = memref.load %arg1[%c20] : memref<24xi32, #tpu.memory_space<smem>>
    %81 = arith.index_cast %80 : i32 to index
    %c0_58 = arith.constant 0 : index
    %82 = vector.load %arg2[%81, %c0_58] : memref<256x128xf32, #tpu.memory_space<vmem>>, vector<1x128xf32>
    %c6_59 = arith.constant 6 : index
    %c256_60 = arith.constant 256 : index
    %83 = vector.load %arg8[%c6_59, %c256_60] : memref<8x384xf32, #tpu.memory_space<vmem>>, vector<1x128xf32>
    tpu.vector_store %arg8[%c6_59, %c256_60], %82 {strides = array<i32>} : memref<8x384xf32, #tpu.memory_space<vmem>>, vector<1x128xf32>,
    %c21 = arith.constant 21 : index
    %84 = memref.load %arg1[%c21] : memref<24xi32, #tpu.memory_space<smem>>
    %85 = arith.index_cast %84 : i32 to index
    %c0_61 = arith.constant 0 : index
    %86 = vector.load %arg2[%85, %c0_61] : memref<256x128xf32, #tpu.memory_space<vmem>>, vector<1x128xf32>
    %c7_62 = arith.constant 7 : index
    %c0_63 = arith.constant 0 : index
    %87 = vector.load %arg8[%c7_62, %c0_63] : memref<8x384xf32, #tpu.memory_space<vmem>>, vector<1x128xf32>
    tpu.vector_store %arg8[%c7_62, %c0_63], %86 {strides = array<i32>} : memref<8x384xf32, #tpu.memory_space<vmem>>, vector<1x128xf32>,
    %c22 = arith.constant 22 : index
    %88 = memref.load %arg1[%c22] : memref<24xi32, #tpu.memory_space<smem>>
    %89 = arith.index_cast %88 : i32 to index
    %c0_64 = arith.constant 0 : index
    %90 = vector.load %arg2[%89, %c0_64] : memref<256x128xf32, #tpu.memory_space<vmem>>, vector<1x128xf32>
    %c7_65 = arith.constant 7 : index
    %c128_66 = arith.constant 128 : index
    %91 = vector.load %arg8[%c7_65, %c128_66] : memref<8x384xf32, #tpu.memory_space<vmem>>, vector<1x128xf32>
    tpu.vector_store %arg8[%c7_65, %c128_66], %90 {strides = array<i32>} : memref<8x384xf32, #tpu.memory_space<vmem>>, vector<1x128xf32>,
    %c23 = arith.constant 23 : index
    %92 = memref.load %arg1[%c23] : memref<24xi32, #tpu.memory_space<smem>>
    %93 = arith.index_cast %92 : i32 to index
    %c0_67 = arith.constant 0 : index
    %94 = vector.load %arg2[%93, %c0_67] : memref<256x128xf32, #tpu.memory_space<vmem>>, vector<1x128xf32>
    %c7_68 = arith.constant 7 : index
    %c256_69 = arith.constant 256 : index
    %95 = vector.load %arg8[%c7_68, %c256_69] : memref<8x384xf32, #tpu.memory_space<vmem>>, vector<1x128xf32>
    tpu.vector_store %arg8[%c7_68, %c256_69], %94 {strides = array<i32>} : memref<8x384xf32, #tpu.memory_space<vmem>>, vector<1x128xf32>,
    %c0_70 = arith.constant 0 : index
    %c0_71 = arith.constant 0 : index
    %96 = vector.load %arg8[%c0_70, %c0_71] : memref<8x384xf32, #tpu.memory_space<vmem>>, vector<8x384xf32>
    %97 = arith.truncf %96 : vector<8x384xf32> to vector<8x384xbf16>
    %c0_72 = arith.constant 0 : index
    %c0_73 = arith.constant 0 : index
    %98 = vector.load %arg3[%c0_72, %c0_73] : memref<384x128xbf16, #tpu.memory_space<vmem>>, vector<384x128xbf16>
    %cst = arith.constant dense<0.000000e+00> : vector<8x128xf32>
    %99 = tpu.matmul %97, %98, %cst {dimension_numbers = #tpu.dot_dimension_numbers<[1], [0], [0], [1], [0, 0, 1, 1], [], []>} : vector<8x384xbf16>, vector<384x128xbf16>, vector<8x128xf32> -> vector<8x128xf32>
    %c0_74 = arith.constant 0 : index
    %c0_75 = arith.constant 0 : index
    %100 = vector.load %arg4[%c0_74, %c0_75] : memref<1x128xf32, #tpu.memory_space<vmem>>, vector<1x128xf32>
    %101 = vector.broadcast %100 : vector<1x128xf32> to vector<8x128xf32>
    %102 = arith.addf %99, %101 : vector<8x128xf32>
    %cst_76 = arith.constant 0.000000e+00 : f32
    %103 = vector.broadcast %cst_76 : f32 to vector<8x128xf32>
    %104 = arith.maximumf %102, %103 : vector<8x128xf32>
    %105 = arith.truncf %104 : vector<8x128xf32> to vector<8x128xbf16>
    %c0_77 = arith.constant 0 : index
    %c0_78 = arith.constant 0 : index
    %106 = vector.load %arg5[%c0_77, %c0_78] : memref<128x256xbf16, #tpu.memory_space<vmem>>, vector<128x256xbf16>
    %cst_79 = arith.constant dense<0.000000e+00> : vector<8x256xf32>
    %107 = tpu.matmul %105, %106, %cst_79 {dimension_numbers = #tpu.dot_dimension_numbers<[1], [0], [0], [1], [0, 0, 1, 1], [], []>} : vector<8x128xbf16>, vector<128x256xbf16>, vector<8x256xf32> -> vector<8x256xf32>
    %c0_80 = arith.constant 0 : index
    %c0_81 = arith.constant 0 : index
    %108 = vector.load %arg6[%c0_80, %c0_81] : memref<1x256xf32, #tpu.memory_space<vmem>>, vector<1x256xf32>
    %109 = vector.broadcast %108 : vector<1x256xf32> to vector<8x256xf32>
    %110 = arith.addf %107, %109 : vector<8x256xf32>
    %c0_82 = arith.constant 0 : index
    %c0_83 = arith.constant 0 : index
    %111 = vector.load %arg7[%c0_82, %c0_83] : memref<8x256xf32, #tpu.memory_space<vmem>>, vector<8x256xf32>
    tpu.vector_store %arg7[%c0_82, %c0_83], %110 {strides = array<i32>} : memref<8x256xf32, #tpu.memory_space<vmem>>, vector<8x256xf32>,
    return
  }
  func.func @transform_0(%arg0: i32, %arg1: memref<24xi32, #tpu.memory_space<smem>>) -> (i32, i32) {
    %c0_i32 = arith.constant 0 : i32
    %c0_i32_0 = arith.constant 0 : i32
    %c0_i32_1 = arith.constant 0 : i32
    return %c0_i32, %c0_i32_0 : i32, i32
  }
  func.func @transform_1(%arg0: i32, %arg1: memref<24xi32, #tpu.memory_space<smem>>) -> (i32, i32) {
    %c0_i32 = arith.constant 0 : i32
    %c0_i32_0 = arith.constant 0 : i32
    %c0_i32_1 = arith.constant 0 : i32
    return %c0_i32, %c0_i32_0 : i32, i32
  }
  func.func @transform_2(%arg0: i32, %arg1: memref<24xi32, #tpu.memory_space<smem>>) -> (i32, i32) {
    %c0_i32 = arith.constant 0 : i32
    %c0_i32_0 = arith.constant 0 : i32
    %c0_i32_1 = arith.constant 0 : i32
    return %c0_i32, %c0_i32_0 : i32, i32
  }
  func.func @transform_3(%arg0: i32, %arg1: memref<24xi32, #tpu.memory_space<smem>>) -> (i32, i32) {
    %c0_i32 = arith.constant 0 : i32
    %c0_i32_0 = arith.constant 0 : i32
    return %c0_i32, %arg0 : i32, i32
  }
  func.func @transform_4(%arg0: i32, %arg1: memref<24xi32, #tpu.memory_space<smem>>) -> (i32, i32) {
    %c0_i32 = arith.constant 0 : i32
    %c0_i32_0 = arith.constant 0 : i32
    return %c0_i32, %arg0 : i32, i32
  }
  func.func @transform_5(%arg0: i32, %arg1: memref<24xi32, #tpu.memory_space<smem>>) -> (i32, i32) {
    %c0_i32 = arith.constant 0 : i32
    %c0_i32_0 = arith.constant 0 : i32
    return %c0_i32, %arg0 : i32, i32
  }
}

</mosaic_0001>

<bundles_post_ra>
// kernel: neural_lm2_forward.1
= control target key start
LH: loop header
LB: loop body
LE: loop exit
PB: predicated region body
PF: predicated region fallthrough
CT: control target
= control target key end

     0   :  { %s1055_s0 = inlined_call_operand.vmem [shape: s32[24], index: 0, kind: input, shape index: {}]   ;;  %s1056_s1 = inlined_call_operand.vmem [shape: f32[256,128], index: 1, kind: input, shape index: {}]   ;;  %s1057_s2 = inlined_call_operand.vmem [shape: bf16[384,128], index: 2, kind: input, shape index: {}]   ;;  %s1058_s3 = inlined_call_operand.vmem [shape: f32[1,128], index: 3, kind: input, shape index: {}]   ;;  %s1059_s4 = inlined_call_operand.vmem [shape: bf16[128,256], index: 4, kind: input, shape index: {}]   ;;  %s1060_s5 = inlined_call_operand.vmem [shape: f32[1,256], index: 5, kind: input, shape index: {}]   ;;  %s1061_s6 = inlined_call_operand.hbm [shape: f32[8,256], index: 6, kind: output, shape index: {}]  }
   0x1   :  { %s11_s23 = sshll.u32 %s1055_s0, 4  ;;  %s12_s23 = int_to_ptr.vmem [resolvable:$true] %s11_s23 }
   0x2   :  { %s769_s24 = scalar_lea.vmem %s12_s23, 16  ;;  %p774_p1 = scmp.lt.s32.totalorder %s12_s23, %s12_s23 }
   0x3   :  { %p770_p0 = scmp.ne.s32.totalorder %s12_s23, %s769_s24  ;;  %p775_p2 = scmp.lt.s32.totalorder %s769_s24, %s769_s24 }
   0x5   :  { %p776_p3 = por %p775_p2, %p774_p1 }
   0x7   :  { %p777_p4 = pnand %p776_p3, %p770_p0 }
   0x9   :  { %780 = shalt.err (!%p777_p4)  }
   0xa   :  { %s805_s25 = smov [#allocation4]  }
   0xb   :  { %14 = dma.vmem_to_smem %s12_s23, 16, %s805_s25, [#allocation3] }
   0xc   :  { %801 = dma.done.wait [#allocation3], 16 }
   0xd   :  { %802 = vsyncadd [#allocation3], 4294967280 }
   0xe   :  { %16 = sfence }
   0xf   :  { %v721_v0 = vld [vmem:[%s1057_s2 + $0x78] sm:$0xff]   ;;  %v806_v1 = vmov 0.0   ;;  %vm807_vm0 = vmmov 0   ;;  %v724_v4 = vld [vmem:[%s1057_s2 + $0x70] sm:$0xff]   ;;  %v727_v7 = vld [vmem:[%s1057_s2 + $0x68] sm:$0xff]   ;;  %s601_s20 = sld [smem:[#allocation4 + $0x1]] }
  0x10   :  { %696 = vmatprep.subr.bf16.mxu1 %v806_v1  ;;  %v722_v2 = vld [vmem:[%s1057_s2 + $0x38] sm:$0xff]   ;;  %665 = vmatprep.subr.bf16.mxu0 %v721_v0  ;;  %v725_v5 = vld [vmem:[%s1057_s2 + $0x30] sm:$0xff]   ;;  %v728_v8 = vld [vmem:[%s1057_s2 + $0x28] sm:$0xff]   ;;  %s604_s21 = sld [smem:[#allocation4 + $0x4]] }
  0x11   :  { %v723_v3 = vld [vmem:[%s1057_s2 + $0xb8] sm:$0xff]   ;;  %712 = vmatprep.mubr.msk.bf16.mxu1 %vm807_vm0, %v806_v1  ;;  %666 = vmatpush3.bf16.msra.mxu0 %v722_v2  ;;  %v726_v6 = vld [vmem:[%s1057_s2 + $0xb0] sm:$0xff]   ;;  %v729_v9 = vld [vmem:[%s1057_s2 + $0xa8] sm:$0xff]   ;;  %s607_s24 = sld [smem:[#allocation4 + $0x7]] }
  0x12   :  { %697 = vmatpush3.bf16.msra.mxu1 %v723_v3  ;;  %667 = vmatprep.subr.bf16.mxu0 %v724_v4  ;;  %v730_v10 = vld [vmem:[%s1057_s2 + $0x60] sm:$0xff]   ;;  %v733_v13 = vld [vmem:[%s1057_s2 + $0x58] sm:$0xff]   ;;  %v736_v16 = vld [vmem:[%s1057_s2 + $0x50] sm:$0xff]   ;;  %s610_s27 = sld [smem:[#allocation4 + $0xa]] }
  0x13   :  { %698 = vmatprep.subr.bf16.mxu1 %v806_v1  ;;  %v731_v11 = vld [vmem:[%s1057_s2 + $0x20] sm:$0xff]   ;;  %v734_v14 = vld [vmem:[%s1057_s2 + $0x18] sm:$0xff]   ;;  %v737_v17 = vld [vmem:[%s1057_s2 + $0x10] sm:$0xff]   ;;  %s613_s0 = sld [smem:[#allocation4 + $0xd]] }
  0x14   :  { %v732_v12 = vld [vmem:[%s1057_s2 + $0xa0] sm:$0xff]   ;;  %v735_v15 = vld [vmem:[%s1057_s2 + $0x98] sm:$0xff]   ;;  %v738_v18 = vld [vmem:[%s1057_s2 + $0x90] sm:$0xff]   ;;  %s616_s30 = sld [smem:[#allocation4 + $0x10]] }
  0x15   :  { %668 = vmatpush3.bf16.msra.mxu0 %v725_v5  ;;  %v739_v19 = vld [vmem:[%s1057_s2 + $0x48] sm:$0xff]   ;;  %v742_v22 = vld [vmem:[%s1057_s2 + $0x40] sm:$0xff]   ;;  %v747_v25 = vld [vmem:[%s1059_s4 + $0x74] ss:$8 sps:$4 sm:$0xff]   ;;  %s34_s9 = scalar_lea.vmem %s1056_s1, %s601_s20  ;;  %s926_s10 = sld [smem:[#allocation4 + $0x13]] }
  0x16   :  { %699 = vmatpush3.bf16.msra.mxu1 %v726_v6  ;;  %669 = vmatprep.subr.bf16.mxu0 %v727_v7  ;;  %v740_v20 = vld [vmem:[%s1057_s2 + $0x8] sm:$0xff]   ;;  %v743_v23 = vld [vmem:[%s1057_s2] sm:$0xff]   ;;  %s46_s12 = scalar_lea.vmem %s1056_s1, %s604_s21  ;;  %s931_s13 = sld [smem:[#allocation4 + $0x16]] }
  0x17   :  { %700 = vmatprep.subr.bf16.mxu1 %v806_v1  ;;  %v741_v21 = vld [vmem:[%s1057_s2 + $0x88] sm:$0xff]   ;;  %v744_v24 = vld [vmem:[%s1057_s2 + $0x80] sm:$0xff]   ;;  %s58_s16 = scalar_lea.vmem %s1056_s1, %s607_s24  ;;  %s29_s17 = sld [smem:[#allocation4]] }
  0x18   :  { %v35_v26 = vld [vmem:[%s34_s9] sm:$0x1]  ;;  %s70_s20 = scalar_lea.vmem %s1056_s1, %s610_s27  ;;  %s603_s22 = sld [smem:[#allocation4 + $0x3]] }
  0x19   :  { %670 = vmatpush3.bf16.msra.mxu0 %v728_v8  ;;  %36 = vst [vmem:[#allocation2 + $0x8] sm:$0x1] %v35_v26  ;;  %v47_v27 = vld [vmem:[%s46_s12] sm:$0x1]  ;;  %s82_s25 = scalar_lea.vmem %s1056_s1, %s613_s0  ;;  %s606_s26 = sld [smem:[#allocation4 + $0x6]] }
  0x1a   :  { %701 = vmatpush3.bf16.msra.mxu1 %v729_v9  ;;  %671 = vmatprep.subr.bf16.mxu0 %v730_v10  ;;  %48 = vst [vmem:[#allocation2 + $0x9] sm:$0x1] %v47_v27  ;;  %v59_v28 = vld [vmem:[%s58_s16] sm:$0x1]  ;;  %s94_s29 = scalar_lea.vmem %s1056_s1, %s616_s30  ;;  %s609_s7 = sld [smem:[#allocation4 + $0x9]] }
  0x1b   :  { %702 = vmatprep.subr.bf16.mxu1 %v806_v1  ;;  %60 = vst [vmem:[#allocation2 + $0xa] sm:$0x1] %v59_v28  ;;  %v71_v29 = vld [vmem:[%s70_s20] sm:$0x1] }
  0x1c   :  { %72 = vst [vmem:[#allocation2 + $0xb] sm:$0x1] %v71_v29  ;;  %v83_v30 = vld [vmem:[%s82_s25] sm:$0x1] }
  0x1d   :  { %672 = vmatpush3.bf16.msra.mxu0 %v731_v11 }
  0x1e   :  { %703 = vmatpush3.bf16.msra.mxu1 %v732_v12  ;;  %673 = vmatprep.subr.bf16.mxu0 %v733_v13 }
  0x1f   :  { %704 = vmatprep.subr.bf16.mxu1 %v806_v1 }
  0x21   :  { %674 = vmatpush3.bf16.msra.mxu0 %v734_v14 }
  0x22   :  { %705 = vmatpush3.bf16.msra.mxu1 %v735_v15  ;;  %675 = vmatprep.subr.bf16.mxu0 %v736_v16 }
  0x23   :  { %706 = vmatprep.subr.bf16.mxu1 %v806_v1 }
  0x25   :  { %676 = vmatpush3.bf16.msra.mxu0 %v737_v17 }
  0x26   :  { %707 = vmatpush3.bf16.msra.mxu1 %v738_v18  ;;  %677 = vmatprep.subr.bf16.mxu0 %v739_v19 }
  0x27   :  { %708 = vmatprep.subr.bf16.mxu1 %v806_v1 }
  0x29   :  { %678 = vmatpush3.bf16.msra.mxu0 %v740_v20 }
  0x2a   :  { %709 = vmatpush3.bf16.msra.mxu1 %v741_v21  ;;  %679 = vmatprep.subr.bf16.mxu0 %v742_v22 }
  0x2b   :  { %710 = vmatprep.subr.bf16.mxu1 %v806_v1 }
  0x2d   :  { %680 = vmatpush3.bf16.msra.mxu0 %v743_v23 }
  0x2e   :  { %711 = vmatpush3.bf16.msra.mxu1 %v744_v24  ;;  %520 = vmatprep.subr.bf16.mxu0 %v747_v25 }
  0x2f   :  { %17 = vsyncpa [#allocation6], 0  ;;  %84 = vst [vmem:[#allocation2 + $0xc] sm:$0x1] %v83_v30  ;;  %v95_v31 = vld [vmem:[%s94_s29] sm:$0x1]  ;;  %s106_s9 = scalar_lea.vmem %s1056_s1, %s926_s10  ;;  %s118_s12 = scalar_lea.vmem %s1056_s1, %s931_s13  ;;  %v430_v22 = vlaneseq }
  0x30   :  { %s612_s11 = sld [smem:[#allocation4 + $0xc]]  ;;  %96 = vst [vmem:[#allocation2 + $0xd] sm:$0x1] %v95_v31  ;;  %v107_v32 = vld [vmem:[%s106_s9] sm:$0x1]  ;;  %s30_s16 = scalar_lea.vmem %s1056_s1, %s29_s17  ;;  %v808_v7 = vmov 0  }
  0x31   :  { %s615_s14 = sld [smem:[#allocation4 + $0xf]]  ;;  %108 = vst [vmem:[#allocation2 + $0xe] sm:$0x1] %v107_v32  ;;  %v119_v33 = vld [vmem:[%s118_s12] sm:$0x1]  ;;  %s42_s10 = scalar_lea.vmem %s1056_s1, %s603_s22  ;;  %v431_v23 = vshrl.u32 %v430_v22, 7 }
  0x32   :  { %s618_s18 = sld [smem:[#allocation4 + $0x12]]  ;;  %120 = vst [vmem:[#allocation2 + $0xf] sm:$0x1] %v119_v33  ;;  %v31_v34 = vld [vmem:[%s30_s16] sm:$0x1]  ;;  %s54_s13 = scalar_lea.vmem %s1056_s1, %s606_s26 }
  0x33   :  { %s621_s21 = sld [smem:[#allocation4 + $0x15]]  ;;  %32 = vst [vmem:[#allocation2] sm:$0x1] %v31_v34  ;;  %v43_v35 = vld [vmem:[%s42_s10] sm:$0x1]  ;;  %s66_s17 = scalar_lea.vmem %s1056_s1, %s609_s7  ;;  %v432_v24 = vsub.s32 0, %v431_v23 }
  0x34   :  { %s602_s28 = sld [smem:[#allocation4 + $0x2]]  ;;  %44 = vst [vmem:[#allocation2 + $0x1] sm:$0x1] %v43_v35  ;;  %v55_v36 = vld [vmem:[%s54_s13] sm:$0x1]  ;;  %v436_v26 = vsub.s32 1, %v431_v23 }
  0x35   :  { %s605_s27 = sld [smem:[#allocation4 + $0x5]]  ;;  %56 = vst [vmem:[#allocation2 + $0x2] sm:$0x1] %v55_v36  ;;  %v67_v37 = vld [vmem:[%s66_s17] sm:$0x1] }
  0x36   :  { %s78_s22 = scalar_lea.vmem %s1056_s1, %s612_s11  ;;  %s608_s0 = sld [smem:[#allocation4 + $0x8]]  ;;  %68 = vst [vmem:[#allocation2 + $0x3] sm:$0x1] %v67_v37  ;;  %v745_v53 = vld [vmem:[%s1059_s4 + $0x70] ss:$8 sps:$4 sm:$0xff]  }
  0x37   :  { %v79_v38 = vld [vmem:[%s78_s22] sm:$0x1]  ;;  %s90_s26 = scalar_lea.vmem %s1056_s1, %s615_s14  ;;  %s611_s30 = sld [smem:[#allocation4 + $0xb]]  ;;  %v750_v55 = vld [vmem:[%s1059_s4 + $0x64] ss:$8 sps:$4 sm:$0xff]  }
  0x38   :  { %80 = vst [vmem:[#allocation2 + $0x4] sm:$0x1] %v79_v38  ;;  %v91_v39 = vld [vmem:[%s90_s26] sm:$0x1]  ;;  %s102_s7 = scalar_lea.vmem %s1056_s1, %s618_s18  ;;  %s614_s19 = sld [smem:[#allocation4 + $0xe]] }
  0x39   :  { %92 = vst [vmem:[#allocation2 + $0x5] sm:$0x1] %v91_v39  ;;  %v103_v40 = vld [vmem:[%s102_s7] sm:$0x1]  ;;  %s114_s11 = scalar_lea.vmem %s1056_s1, %s621_s21  ;;  %s617_s23 = sld [smem:[#allocation4 + $0x11]]  ;;  %v126_v41 = vld [vmem:[#allocation2 + $0x8] sm:$0xff] }
  0x3a   :  { %104 = vst [vmem:[#allocation2 + $0x6] sm:$0x1] %v103_v40  ;;  %v115_v42 = vld [vmem:[%s114_s11] sm:$0x1]  ;;  %s38_s13 = scalar_lea.vmem %s1056_s1, %s602_s28  ;;  %s620_s24 = sld [smem:[#allocation4 + $0x14]]  ;;  %v129_v43 = vpack.c.bf16 %v126_v41, %v126_v41 }
  0x3b   :  { %116 = vst [vmem:[#allocation2 + $0x7] sm:$0x1] %v115_v42  ;;  %v39_v44 = vld [vmem:[%s38_s13] sm:$0x1]  ;;  %s50_s17 = scalar_lea.vmem %s1056_s1, %s605_s27  ;;  %s623_s8 = sld [smem:[#allocation4 + $0x17]] }
  0x3c   :  { %40 = vst [vmem:[#allocation2 + $0x10] sm:$0x1] %v39_v44  ;;  %v51_v45 = vld [vmem:[%s50_s17] sm:$0x1]  ;;  %s62_s22 = scalar_lea.vmem %s1056_s1, %s608_s0  ;;  %362 = vmatprep.mubr.bf16.mxu0 %v129_v43  ;;  %v753_v57 = vld [vmem:[%s1059_s4 + $0x54] ss:$8 sps:$4 sm:$0xff]  }
  0x3d   :  { %52 = vst [vmem:[#allocation2 + $0x11] sm:$0x1] %v51_v45  ;;  %v63_v46 = vld [vmem:[%s62_s22] sm:$0x1]  ;;  %s74_s12 = scalar_lea.vmem %s1056_s1, %s611_s30  ;;  %v751_v59 = vld [vmem:[%s1059_s4 + $0x50] ss:$8 sps:$4 sm:$0xff]  }
  0x3e   :  { %64 = vst [vmem:[#allocation2 + $0x12] sm:$0x1] %v63_v46  ;;  %v75_v47 = vld [vmem:[%s74_s12] sm:$0x1]  ;;  %s86_s27 = scalar_lea.vmem %s1056_s1, %s614_s19  ;;  %v756_v61 = vld [vmem:[%s1059_s4 + $0x44] ss:$8 sps:$4 sm:$0xff]  }
  0x3f   :  { %76 = vst [vmem:[#allocation2 + $0x13] sm:$0x1] %v75_v47  ;;  %v87_v48 = vld [vmem:[%s86_s27] sm:$0x1]  ;;  %s98_s20 = scalar_lea.vmem %s1056_s1, %s617_s23  ;;  %v759_v63 = vld [vmem:[%s1059_s4 + $0x34] ss:$8 sps:$4 sm:$0xff]  }
  0x40   :  { %88 = vst [vmem:[#allocation2 + $0x14] sm:$0x1] %v87_v48  ;;  %v99_v49 = vld [vmem:[%s98_s20] sm:$0x1]  ;;  %s110_s11 = scalar_lea.vmem %s1056_s1, %s620_s24  ;;  %v757_v0 = vld [vmem:[%s1059_s4 + $0x30] ss:$8 sps:$4 sm:$0xff]  }
  0x41   :  { %100 = vst [vmem:[#allocation2 + $0x15] sm:$0x1] %v99_v49  ;;  %v111_v50 = vld [vmem:[%s110_s11] sm:$0x1]  ;;  %s122_s14 = scalar_lea.vmem %s1056_s1, %s623_s8  ;;  %v762_v1 = vld [vmem:[%s1059_s4 + $0x24] ss:$8 sps:$4 sm:$0xff]  }
  0x42   :  { %v125_v51 = vld [vmem:[#allocation2] sm:$0xff]  ;;  %112 = vst [vmem:[#allocation2 + $0x16] sm:$0x1] %v111_v50  ;;  %v765_v3 = vld [vmem:[%s1059_s4 + $0x14] ss:$8 sps:$4 sm:$0xff]  }
  0x43   :  { %v123_v52 = vld [vmem:[%s122_s14] sm:$0x1]  ;;  %v128_v54 = vpack.c.bf16 %v125_v51, %v125_v51  ;;  %v763_v4 = vld [vmem:[%s1059_s4 + $0x10] ss:$8 sps:$4 sm:$0xff]   ;;  %v768_v6 = vld [vmem:[%s1059_s4 + $0x4] ss:$8 sps:$4 sm:$0xff]  }
  0x44   :  { %124 = vst [vmem:[#allocation2 + $0x17] sm:$0x1] %v123_v52  ;;  %v748_v56 = vld [vmem:[%s1059_s4 + $0x60] ss:$8 sps:$4 sm:$0xff]  }
  0x45   :  { %363 = vmatmul.mubr.bf16.vlgmr.msra.gmra.mxu0 %v128_v54  ;;  %v754_v62 = vld [vmem:[%s1059_s4 + $0x40] ss:$8 sps:$4 sm:$0xff]  }
  0x46   :  { %521 = vmatpush1.bf16.msra.mxu0 %v745_v53  ;;  %v760_v2 = vld [vmem:[%s1059_s4 + $0x20] ss:$8 sps:$4 sm:$0xff]   ;;  %552 = vmatprep.mubr.bf16.mxu0 %v808_v7 }
  0x47   :  { %522 = vmatprep.subr.bf16.mxu0 %v750_v55  ;;  %v766_v5 = vld [vmem:[%s1059_s4] ss:$8 sps:$4 sm:$0xff]  }
  0x48   :  { %v624_v9 = vld [vmem:[%s1058_s3] ss:$0 sm:$0xff]  ;;  %s809_s3 = smov [#allocation5]  }
  0x49   :  { %v428_v25 = vld [vmem:[%s1060_s5] sm:$0x3]  ;;  %s569_s1 = sshll.u32 %s809_s3, 4  ;;  %s570_s1 = int_to_ptr.vmem [resolvable:$true] %s569_s1 }
  0x4a   :  { %523 = vmatpush1.bf16.msra.mxu0 %v748_v56  ;;  %v433_v27 = vrot.slane %v428_v25, %v432_v24  ;;  %v437_v28 = vrot.slane %v428_v25, %v436_v26  ;;  %s781_s17 = scalar_lea.vmem %s570_s1, 256  ;;  %p786_p6 = scmp.lt.s32.totalorder %s570_s1, %s570_s1 }
  0x4b   :  { %v127_v58 = vld [vmem:[#allocation2 + $0x10] sm:$0xff]  ;;  %524 = vmatprep.subr.bf16.mxu0 %v753_v57  ;;  %p782_p5 = scmp.ne.s32.totalorder %s570_s1, %s781_s17  ;;  %p787_p7 = scmp.lt.s32.totalorder %s781_s17, %s781_s17 }
  0x4c   :  { %v130_v60 = vpack.c.bf16 %v127_v58, %v127_v58 }
  0x4d   :  { %p788_p8 = por %p787_p7, %p786_p6 }
  0x4e   :  { %713 = vmatmul.mubr.bf16.vlgmr.msra.gmra.mxu1 %v130_v60  ;;  %525 = vmatpush1.bf16.msra.mxu0 %v751_v59 }
  0x4f   :  { %526 = vmatprep.subr.bf16.mxu0 %v756_v61  ;;  %p789_p9 = pnand %p788_p8, %p782_p5 }
  0x52   :  { %527 = vmatpush1.bf16.msra.mxu0 %v754_v62 }
  0x53   :  { %528 = vmatprep.subr.bf16.mxu0 %v759_v63 }
  0x56   :  { %529 = vmatpush1.bf16.msra.mxu0 %v757_v0 }
  0x57   :  { %530 = vmatprep.subr.bf16.mxu0 %v762_v1 }
  0x5a   :  { %531 = vmatpush1.bf16.msra.mxu0 %v760_v2 }
  0x5b   :  { %532 = vmatprep.subr.bf16.mxu0 %v765_v3 }
  0x5e   :  { %533 = vmatpush1.bf16.msra.mxu0 %v763_v4 }
  0x5f   :  { %534 = vmatprep.subr.bf16.mxu0 %v768_v6 }
  0x62   :  { %535 = vmatpush1.bf16.msra.mxu0 %v766_v5 }
 0x105   :  { %v681_v8 = vpop.f32.mrf.mxu0 }
 0x107   :  { %v682_v10 = vpop.f32.mrf.mxu0 }
 0x108   :  { %v683_v11 = vadd.f32 %v682_v10, %v681_v8 }
 0x109   :  { %v684_v12 = vpop.f32.mrf.mxu0 }
 0x10a   :  { %v365_v13 = vadd.f32 %v683_v11, %v624_v9 }
 0x10b   :  { %v685_v14 = vpop.f32.mrf.mxu0 }
 0x10e   :  { %v404_v15 = vpop.f32.mrf.mxu1 }
 0x10f   :  { %v405_v16 = vadd.f32 %v404_v15, %v365_v13 }
 0x110   :  { %v714_v17 = vpop.f32.mrf.mxu1 }
 0x111   :  { %v410_v18 = vmax.f32 %v405_v16, 0.0 }
 0x112   :  { %v407_v19 = vpop.f32.mrf.mxu1 }
 0x113   :  { %v411_v20 = vpack.c.bf16 %v410_v18, %v410_v18 }
 0x114   :  { %v715_v21 = vpop.f32.mrf.mxu1 }
 0x115   :  { %553 = vmatmul.mubr.bf16.vlgmr.msra.gmra.mxu0 %v411_v20 }
 0x1d5   :  { %v554_v29 = vpop.f32.mrf.mxu0 }
 0x1d6   :  { %v555_v30 = vadd.f32 %v554_v29, %v433_v27 }
 0x1d7   :  { %v556_v31 = vpop.f32.mrf.mxu0 }
 0x1d8   :  { %561 = vst [vmem:[#allocation5] sm:$0xff] %v555_v30  ;;  %v557_v32 = vadd.f32 %v556_v31, %v437_v28 }
 0x1d9   :  { %v558_v33 = vpop.f32.mrf.mxu0 }
 0x1da   :  { %562 = vst [vmem:[#allocation5 + $0x8] sm:$0xff] %v557_v32 }
 0x1db   :  { %v559_v34 = vpop.f32.mrf.mxu0 }
 0x1dc   :  { %792 = shalt.err (!%p789_p9)
}
 0x1dd   :  { %572 = dma.vmem_to_hbm [thread:$0]  %s570_s1, 256, %s1061_s6, [#allocation6]  }
 0x1de   :  { %803 = dma.done.wait [#allocation6], 256  }
 0x1df   :  { %804 = vsyncadd [#allocation6], 4294967040 }
 0x1e0   :  { %576 = vsyncpa [#allocation6], 1 }

</bundles_post_ra>
